<compile_context>
chip_gen: v6e
topology: v6e:2x2x1
jax: 0.10.0
libtpu: 0.0.40
codegen_flags: <defaults>
</compile_context>

<pallas_src>
import functools

import jax
import jax.numpy as jnp
from jax.experimental import pallas as pl
from jax.experimental.pallas import tpu as pltpu


def _round_up(v, m):
    return -(-v // m) * m


def _spatial_attention_kernel(x_ref, b_ref, o_ref, *, kernel_size):
    # x_ref: (Nb, C, H, W)   Nb batch elements of the NCHW input
    # b_ref: (2*K*W, W)      stacked banded kw-tap matrices, row-block order (kh, ch)
    # o_ref: (Nb, H, W)      sigmoid attention map
    nb, _, h, w = x_ref.shape
    k = kernel_size
    pad = (k - 1) // 2
    rows = nb * h

    x = x_ref[...].astype(jnp.float32)
    # Channel pooling on the VPU (the mean's 1/C is folded into B's avg taps).
    avg = jnp.sum(x, axis=1)                                   # (Nb, H, W)
    mx = jnp.max(x, axis=1)                                    # (Nb, H, W)
    # Stack the Nb images along the row axis so one MXU matmul sees M = Nb*H.
    pooled = jnp.concatenate([avg, mx], axis=-1).reshape(rows, 2 * w)   # (Nb*H, 2W)

    # Image-local row index of every stacked row (reshaped iota; no div/mod).
    row_in_img = jax.lax.broadcasted_iota(
        jnp.int32, (nb, h, 2 * w), 1).reshape(rows, 2 * w)

    # kh taps: XLU sublane roll + row mask (replaces the old 0/1 A matmuls).
    # The mask zeroes both the conv's zero-padding rows and the rows a circular
    # roll would wrap in from the adjacent image -- they are the same rows.
    pieces = []
    for kh in range(k):
        d = kh - pad                                  # static row offset of this tap
        if d == 0:
            pieces.append(pooled)
            continue
        shifted = pltpu.roll(pooled, (-d) % rows, axis=0)   # shifted[r] = pooled[r+d]
        valid = (row_in_img < h - d) if d > 0 else (row_in_img >= -d)
        pieces.append(jnp.where(valid, shifted, 0.0))
    lhs = jnp.concatenate(pieces, axis=-1)            # (Nb*H, 2*K*W)

    # One fused MXU pass (contraction 2*K*W) instead of 21 tiny matmuls.
    acc = jnp.dot(lhs, b_ref[...], preferred_element_type=jnp.float32)  # (Nb*H, W)
    out = 1.0 / (1.0 + jnp.exp(-acc))                 # sigmoid: exp runs on the EUP
    o_ref[...] = out.reshape(nb, h, w).astype(o_ref.dtype)


def build_spatial_attention_tables(weight_oihw, *, kernel_size, width, channels):
    """Precompute the stacked banded conv matrix B.  Built ONCE, outside the
    jitted hot path.  Row-block order is (kh, channel) to match the kernel's
    lhs column layout; the 1/C mean factor is folded into the avg-channel taps.
    """
    k, w_dim, c = kernel_size, width, channels
    pad = (k - 1) // 2
    wts = jnp.asarray(weight_oihw, jnp.float32).reshape(2, k, k)   # (in_ch, kh, kw)
    wts = wts.at[0].multiply(1.0 / c)                              # fold mean's 1/C
    # banded[ch, kh, wi, j] = wts[ch, kh, wi - j + pad] if |wi - j| <= pad else 0
    d = jnp.arange(w_dim)[:, None] - jnp.arange(w_dim)[None, :] + pad
    valid = (d >= 0) & (d < k)
    banded = jnp.where(valid[None, None], wts[:, :, jnp.clip(d, 0, k - 1)], 0.0)
    return banded.transpose(1, 0, 2, 3).reshape(2 * k * w_dim, w_dim)  # (2K*W, W)


def _pick_block_n(n, c, h, w, itemsize=4, x_budget_bytes=16 * 1024 * 1024):
    """Batch elements per grid step: fill the MXU M dim (target Nb*H >= 256)
    without blowing the double-buffered, lane-padded x block past ~budget."""
    per_elem = c * _round_up(h, 8) * _round_up(w, 128) * itemsize
    cap = max(1, x_budget_bytes // (2 * per_elem))            # 2x: double buffering
    nb = max(1, min(n, _round_up(256, h) // h, cap))
    while n % nb:
        nb -= 1
    # Prefer >= 2 grid steps (v7x megacore) if the M dim stays reasonably full.
    if n // nb == 1 and nb > 1 and (nb // 2) * h >= 256 and n % (nb // 2) == 0:
        nb //= 2
    return nb


def _vmem_limit_bytes(nb, c, h, w, k):
    lane_w = _round_up(w, 128)
    lane_lhs = _round_up(2 * k * w, 128)
    sub_h = _round_up(h, 8)
    x_blk = nb * c * sub_h * lane_w * 4
    o_blk = nb * sub_h * lane_w * 4
    b_blk = _round_up(2 * k * w, 8) * lane_w * 4
    tmp = 3 * _round_up(nb * h, 8) * lane_lhs * 4             # lhs / rolled copies
    return max(16 << 20, 2 * (x_blk + o_blk + b_blk) + tmp + (4 << 20))


@functools.partial(jax.jit, static_argnames=("kernel_size", "block_n"))
def spatial_attention(x_nchw, b_stack, *, kernel_size=7, block_n=None):
    """x_nchw: (N, C, H, W).  b_stack: from build_spatial_attention_tables."""
    assert kernel_size in (3, 7), "kernel size must be 3 or 7"
    n, c, h, w = x_nchw.shape
    k = kernel_size
    assert b_stack.shape == (2 * k * w, w), b_stack.shape

    nb = block_n if block_n is not None else _pick_block_n(n, c, h, w)
    assert n % nb == 0

    out = pl.pallas_call(
        functools.partial(_spatial_attention_kernel, kernel_size=k),
        out_shape=jax.ShapeDtypeStruct((n, h, w), x_nchw.dtype),
        grid_spec=pltpu.PrefetchScalarGridSpec(
            num_scalar_prefetch=0,
            grid=(n // nb,),
            in_specs=[
                pl.BlockSpec((nb, c, h, w), lambda i: (i, 0, 0, 0)),
                pl.BlockSpec((2 * k * w, w), lambda i: (0, 0)),
            ],
            out_specs=pl.BlockSpec((nb, h, w), lambda i: (i, 0, 0)),
        ),
        compiler_params=pltpu.CompilerParams(
            dimension_semantics=("parallel",),
            vmem_limit_bytes=_vmem_limit_bytes(nb, c, h, w, k)),
    )(x_nchw, b_stack)
    # Degenerate-dim reshape back to the module's (N, 1, H, W) output is free.
    return out.reshape(n, 1, h, w)


def _reference(x, weight, kernel_size):
    pad = (kernel_size - 1) // 2
    avg = jnp.mean(x, axis=1, keepdims=True)
    mx = jnp.max(x, axis=1, keepdims=True)
    cat = jnp.concatenate([avg, mx], axis=1)                   # (N, 2, H, W)
    conv = jax.lax.conv_general_dilated(
        cat, weight, window_strides=(1, 1),
        padding=((pad, pad), (pad, pad)),
        dimension_numbers=("NCHW", "OIHW", "NCHW"))
    return jax.nn.sigmoid(conv)


if __name__ == "__main__":
    # Deterministic synthetic inputs; shapes consistent with the module.
    N, C, H, W = 2, 4, 16, 16
    K = 7                                                      # default kernel_size
    key = jax.random.PRNGKey(0)
    kx, kw = jax.random.split(key)
    x = jax.random.normal(kx, (N, C, H, W), dtype=jnp.float32)
    weight = jax.random.normal(kw, (1, 2, K, K), dtype=jnp.float32) * 0.1

    # B is built once, outside the jitted hot path.
    b_stack = build_spatial_attention_tables(weight, kernel_size=K, width=W, channels=C)

    out = spatial_attention(x, b_stack, kernel_size=K)
    out = jax.block_until_ready(out)

    ref = _reference(x, weight, K)
    assert out.shape == ref.shape and out.dtype == ref.dtype
    max_err = float(jnp.max(jnp.abs(out - ref)))
    # f32 MXU matmul vs. XLA's conv; small margin for accumulation-order diffs.
    assert max_err < 5e-5, f"mismatch vs reference: {max_err}"

    print("KERNEL_OK")
</pallas_src>

<mosaic_0001>
module attributes {stable_mosaic.version = 11 : i64} {
  func.func @_spatial_attention_kernel(%arg0: i32, %arg1: memref<2x4x16x16xf32, #tpu.memory_space<vmem>>, %arg2: memref<224x16xf32, #tpu.memory_space<vmem>>, %arg3: memref<2x16x16xf32, #tpu.memory_space<vmem>>) attributes {dimension_semantics = [#tpu.dimension_semantics<parallel>], iteration_bounds = array<i64: 1>, scalar_prefetch = 0 : i64, scratch_operands = 0 : i64, tpu.core_type = #tpu.core_type<tc>, window_params = [{transform_indices = @transform_0, window_bounds = array<i64: 2, 4, 16, 16>}, {pipeline_mode = #tpu.pipeline_mode<synchronous>, transform_indices = @transform_1, window_bounds = array<i64: 224, 16>}, {transform_indices = @transform_2, window_bounds = array<i64: 2, 16, 16>}]} {
    %c0 = arith.constant 0 : index
    %c0_0 = arith.constant 0 : index
    %c0_1 = arith.constant 0 : index
    %c0_2 = arith.constant 0 : index
    %0 = vector.load %arg1[%c0, %c0_0, %c0_1, %c0_2] : memref<2x4x16x16xf32, #tpu.memory_space<vmem>>, vector<2x4x16x16xf32>
    %cst = arith.constant dense<0.000000e+00> : vector<2x16x16xf32>
    %1 = vector.multi_reduction <add>, %0, %cst [1] : vector<2x4x16x16xf32> to vector<2x16x16xf32>
    %cst_3 = arith.constant dense<0xFF800000> : vector<2x16x16xf32>
    %2 = vector.multi_reduction <maximumf>, %0, %cst_3 [1] : vector<2x4x16x16xf32> to vector<2x16x16xf32>
    %3 = tpu.concatenate %1, %2 in 2 : vector<2x16x16xf32>, vector<2x16x16xf32> -> vector<2x16x32xf32>
    %4 = vector.shape_cast %3 : vector<2x16x32xf32> to vector<32x32xf32>
    %5 = tpu.iota {dimensions = array<i32: 1>} : vector<2x16x32xi32>
    %6 = vector.shape_cast %5 : vector<2x16x32xi32> to vector<32x32xi32>
    %c3_i32 = arith.constant 3 : i32
    %7 = tpu.dynamic_rotate %4 by %c3_i32 dim 0 : vector<32x32xf32>, i32 -> vector<32x32xf32>
    %c3_i32_4 = arith.constant 3 : i32
    %8 = vector.broadcast %c3_i32_4 : i32 to vector<32x32xi32>
    %9 = arith.cmpi sge, %6, %8 : vector<32x32xi32>
    %cst_5 = arith.constant 0.000000e+00 : f32
    %10 = vector.broadcast %cst_5 : f32 to vector<32x32xf32>
    %11 = arith.select %9, %7, %10 : vector<32x32xi1>, vector<32x32xf32>
    %c2_i32 = arith.constant 2 : i32
    %12 = tpu.dynamic_rotate %4 by %c2_i32 dim 0 : vector<32x32xf32>, i32 -> vector<32x32xf32>
    %c2_i32_6 = arith.constant 2 : i32
    %13 = vector.broadcast %c2_i32_6 : i32 to vector<32x32xi32>
    %14 = arith.cmpi sge, %6, %13 : vector<32x32xi32>
    %cst_7 = arith.constant 0.000000e+00 : f32
    %15 = vector.broadcast %cst_7 : f32 to vector<32x32xf32>
    %16 = arith.select %14, %12, %15 : vector<32x32xi1>, vector<32x32xf32>
    %c1_i32 = arith.constant 1 : i32
    %17 = tpu.dynamic_rotate %4 by %c1_i32 dim 0 : vector<32x32xf32>, i32 -> vector<32x32xf32>
    %c1_i32_8 = arith.constant 1 : i32
    %18 = vector.broadcast %c1_i32_8 : i32 to vector<32x32xi32>
    %19 = arith.cmpi sge, %6, %18 : vector<32x32xi32>
    %cst_9 = arith.constant 0.000000e+00 : f32
    %20 = vector.broadcast %cst_9 : f32 to vector<32x32xf32>
    %21 = arith.select %19, %17, %20 : vector<32x32xi1>, vector<32x32xf32>
    %c31_i32 = arith.constant 31 : i32
    %22 = tpu.dynamic_rotate %4 by %c31_i32 dim 0 : vector<32x32xf32>, i32 -> vector<32x32xf32>
    %c15_i32 = arith.constant 15 : i32
    %23 = vector.broadcast %c15_i32 : i32 to vector<32x32xi32>
    %24 = arith.cmpi slt, %6, %23 : vector<32x32xi32>
    %cst_10 = arith.constant 0.000000e+00 : f32
    %25 = vector.broadcast %cst_10 : f32 to vector<32x32xf32>
    %26 = arith.select %24, %22, %25 : vector<32x32xi1>, vector<32x32xf32>
    %c30_i32 = arith.constant 30 : i32
    %27 = tpu.dynamic_rotate %4 by %c30_i32 dim 0 : vector<32x32xf32>, i32 -> vector<32x32xf32>
    %c14_i32 = arith.constant 14 : i32
    %28 = vector.broadcast %c14_i32 : i32 to vector<32x32xi32>
    %29 = arith.cmpi slt, %6, %28 : vector<32x32xi32>
    %cst_11 = arith.constant 0.000000e+00 : f32
    %30 = vector.broadcast %cst_11 : f32 to vector<32x32xf32>
    %31 = arith.select %29, %27, %30 : vector<32x32xi1>, vector<32x32xf32>
    %c29_i32 = arith.constant 29 : i32
    %32 = tpu.dynamic_rotate %4 by %c29_i32 dim 0 : vector<32x32xf32>, i32 -> vector<32x32xf32>
    %c13_i32 = arith.constant 13 : i32
    %33 = vector.broadcast %c13_i32 : i32 to vector<32x32xi32>
    %34 = arith.cmpi slt, %6, %33 : vector<32x32xi32>
    %cst_12 = arith.constant 0.000000e+00 : f32
    %35 = vector.broadcast %cst_12 : f32 to vector<32x32xf32>
    %36 = arith.select %34, %32, %35 : vector<32x32xi1>, vector<32x32xf32>
    %37 = tpu.concatenate %11, %16, %21, %4, %26, %31, %36 in 1 : vector<32x32xf32>, vector<32x32xf32>, vector<32x32xf32>, vector<32x32xf32>, vector<32x32xf32>, vector<32x32xf32>, vector<32x32xf32> -> vector<32x224xf32>
    %c0_13 = arith.constant 0 : index
    %c0_14 = arith.constant 0 : index
    %38 = vector.load %arg2[%c0_13, %c0_14] : memref<224x16xf32, #tpu.memory_space<vmem>>, vector<224x16xf32>
    %cst_15 = arith.constant dense<0.000000e+00> : vector<32x16xf32>
    %39 = tpu.matmul %37, %38, %cst_15 {dimension_numbers = #tpu.dot_dimension_numbers<[1], [0], [0], [1], [0, 0, 1, 1], [], []>} : vector<32x224xf32>, vector<224x16xf32>, vector<32x16xf32> -> vector<32x16xf32>
    %cst_16 = arith.constant 0.000000e+00 : f32
    %40 = vector.broadcast %cst_16 : f32 to vector<32x16xf32>
    %41 = arith.subf %40, %39 : vector<32x16xf32>
    %42 = math.exp %41 : vector<32x16xf32>
    %cst_17 = arith.constant 1.000000e+00 : f32
    %43 = vector.broadcast %cst_17 : f32 to vector<32x16xf32>
    %44 = arith.addf %43, %42 : vector<32x16xf32>
    %cst_18 = arith.constant 1.000000e+00 : f32
    %45 = vector.broadcast %cst_18 : f32 to vector<32x16xf32>
    %46 = arith.divf %45, %44 : vector<32x16xf32>
    %47 = vector.shape_cast %46 : vector<32x16xf32> to vector<2x16x16xf32>
    %c0_19 = arith.constant 0 : index
    %c0_20 = arith.constant 0 : index
    %c0_21 = arith.constant 0 : index
    %48 = vector.load %arg3[%c0_19, %c0_20, %c0_21] : memref<2x16x16xf32, #tpu.memory_space<vmem>>, vector<2x16x16xf32>
    tpu.vector_store %arg3[%c0_19, %c0_20, %c0_21], %47 {strides = array<i32>} : memref<2x16x16xf32, #tpu.memory_space<vmem>>, vector<2x16x16xf32>,
    return
  }
  func.func @transform_0(%arg0: i32) -> (i32, i32, i32, i32) {
    %c0_i32 = arith.constant 0 : i32
    %c0_i32_0 = arith.constant 0 : i32
    %c0_i32_1 = arith.constant 0 : i32
    %c0_i32_2 = arith.constant 0 : i32
    return %arg0, %c0_i32, %c0_i32_0, %c0_i32_1 : i32, i32, i32, i32
  }
  func.func @transform_1(%arg0: i32) -> (i32, i32) {
    %c0_i32 = arith.constant 0 : i32
    %c0_i32_0 = arith.constant 0 : i32
    %c0_i32_1 = arith.constant 0 : i32
    return %c0_i32, %c0_i32_0 : i32, i32
  }
  func.func @transform_2(%arg0: i32) -> (i32, i32, i32) {
    %c0_i32 = arith.constant 0 : i32
    %c0_i32_0 = arith.constant 0 : i32
    %c0_i32_1 = arith.constant 0 : i32
    return %arg0, %c0_i32, %c0_i32_0 : i32, i32, i32
  }
}

</mosaic_0001>

<bundles_post_ra>
// kernel: spatial_attention.1
= control target key start
LH: loop header
LB: loop body
LE: loop exit
PB: predicated region body
PF: predicated region fallthrough
CT: control target
= control target key end

     0   :  { %vm28_vm0 = vcmask 130048   ;;  %s1067_s0 = inlined_call_operand.vmem [shape: f32[2,4,16,16], index: 0, kind: input, shape index: {}]   ;;  %s1068_s1 = inlined_call_operand.vmem [shape: f32[224,16], index: 1, kind: input, shape index: {}]   ;;  %s1069_s2 = inlined_call_operand.hbm [shape: f32[2,16,16], index: 2, kind: output, shape index: {}]  }
   0x1   :  { %v20_v0 = vld [vmem:[%s1067_s0 + $0x40] sm:$0xff]  ;;  %v22_v1 = vld [vmem:[%s1067_s0 + $0x50] sm:$0xff]  ;;  %v21_v26 = vld [vmem:[%s1067_s0 + $0x48] sm:$0xff] }
   0x2   :  { %v24_v2 = vld [vmem:[%s1067_s0 + $0x60] sm:$0xff]  ;;  %v26_v3 = vld [vmem:[%s1067_s0 + $0x70] sm:$0xff]  ;;  %v44_v4 = vsel %vm28_vm0, %v22_v1, 0.0  ;;  %v71_v5 = vsel %vm28_vm0, %v20_v0, -inf  ;;  %v72_v6 = vsel %vm28_vm0, %v22_v1, -inf  ;;  %v43_v15 = vsel %vm28_vm0, %v20_v0, 0.0 }
   0x3   :  { %v12_v7 = vld [vmem:[%s1067_s0] sm:$0xff]  ;;  %v46_v8 = vsel %vm28_vm0, %v24_v2, 0.0  ;;  %v73_v9 = vmax.f32 %v71_v5, %v72_v6  ;;  %v74_v10 = vsel %vm28_vm0, %v24_v2, -inf  ;;  %v14_v11 = vld [vmem:[%s1067_s0 + $0x10] sm:$0xff]  ;;  %v48_v13 = vsel %vm28_vm0, %v26_v3, 0.0  ;;  %v23_v27 = vld [vmem:[%s1067_s0 + $0x58] sm:$0xff] }
   0x4   :  { %v16_v12 = vld [vmem:[%s1067_s0 + $0x20] sm:$0xff]  ;;  %v76_v14 = vsel %vm28_vm0, %v26_v3, -inf  ;;  %v18_v16 = vld [vmem:[%s1067_s0 + $0x30] sm:$0xff]  ;;  %v30_v17 = vsel %vm28_vm0, %v14_v11, 0.0  ;;  %v45_v19 = vadd.f32 %v44_v4, %v43_v15  ;;  %v57_v20 = vsel %vm28_vm0, %v12_v7, -inf  ;;  %v25_v32 = vld [vmem:[%s1067_s0 + $0x68] sm:$0xff] }
   0x5   :  { %v75_v18 = vmax.f32 %v73_v9, %v74_v10  ;;  %v58_v21 = vsel %vm28_vm0, %v14_v11, -inf  ;;  %v32_v22 = vsel %vm28_vm0, %v16_v12, 0.0  ;;  %v60_v24 = vsel %vm28_vm0, %v16_v12, -inf }
   0x6   :  { %v59_v23 = vmax.f32 %v57_v20, %v58_v21  ;;  %v29_v25 = vsel %vm28_vm0, %v12_v7, 0.0  ;;  %v47_v29 = vadd.f32 %v46_v8, %v45_v19  ;;  %v62_v30 = vsel %vm28_vm0, %v18_v16, -inf }
   0x7   :  { %v77_v28 = vmax.f32 %v75_v18, %v76_v14  ;;  %v31_v31 = vadd.f32 %v30_v17, %v29_v25 }
   0x8   :  { %7 = vsyncpa [#allocation3], 0  ;;  %v34_v33 = vsel %vm28_vm0, %v18_v16, 0.0  ;;  %v61_v34 = vmax.f32 %v59_v23, %v60_v24  ;;  %v27_v35 = vld [vmem:[%s1067_s0 + $0x78] sm:$0xff]  ;;  %v50_v36 = vsel %vm28_vm0, %v21_v26, 0.0  ;;  %s606_s5 = smov 16   ;;  %v683_v37 = vadd.f32 %v48_v13, %v47_v29 }
   0x9   :  { %93 = vrot.lane.b32.xlu1 %v77_v28, %s606_s5  ;;  %v33_v38 = vadd.f32 %v32_v22, %v31_v31  ;;  %v78_v39 = vsel %vm28_vm0, %v21_v26, -inf  ;;  %v79_v40 = vsel %vm28_vm0, %v23_v27, -inf  ;;  %v13_v41 = vld [vmem:[%s1067_s0 + $0x8] sm:$0xff]  ;;  %v15_v42 = vld [vmem:[%s1067_s0 + $0x18] sm:$0xff]  ;;  %v51_v44 = vsel %vm28_vm0, %v23_v27, 0.0  ;;  %v315_v10 = vld [vmem:[%s1068_s1 + $0x70] sm:$0xff] }
   0xa   :  { %v63_v43 = vmax.f32 %v61_v34, %v62_v30  ;;  %v80_v45 = vmax.f32 %v78_v39, %v79_v40  ;;  %v81_v46 = vsel %vm28_vm0, %v25_v32, -inf  ;;  %v17_v47 = vld [vmem:[%s1067_s0 + $0x28] sm:$0xff]  ;;  %v83_v49 = vsel %vm28_vm0, %v27_v35, -inf  ;;  %v19_v50 = vld [vmem:[%s1067_s0 + $0x38] sm:$0xff]  ;;  %v313_v12 = vld [vmem:[%s1068_s1 + $0x60] sm:$0xff]  ;;  %s608_s28 = smov 96  }
   0xb   :  { %v698_v48 = vadd.f32 %v34_v33, %v33_v38  ;;  %v36_v51 = vsel %vm28_vm0, %v13_v41, 0.0  ;;  %v37_v52 = vsel %vm28_vm0, %v15_v42, 0.0  ;;  %v53_v53 = vsel %vm28_vm0, %v25_v32, 0.0  ;;  %v316_v8 = vld [vmem:[%s1068_s1 + $0x78] sm:$0xff]  ;;  %v314_v11 = vld [vmem:[%s1068_s1 + $0x68] sm:$0xff]  ;;  %v311_v14 = vld [vmem:[%s1068_s1 + $0x50] sm:$0xff] }
   0xc   :  { %89 = vrot.lane.b32.xlu0 %v63_v43, %s606_s5  ;;  %v82_v54 = vmax.f32 %v80_v45, %v81_v46  ;;  %v64_v55 = vsel %vm28_vm0, %v13_v41, -inf  ;;  %v65_v56 = vsel %vm28_vm0, %v15_v42, -inf  ;;  %v39_v57 = vsel %vm28_vm0, %v17_v47, 0.0  ;;  %v312_v13 = vld [vmem:[%s1068_s1 + $0x58] sm:$0xff]  ;;  %v310_v15 = vld [vmem:[%s1068_s1 + $0x48] sm:$0xff]  ;;  %v309_v16 = vld [vmem:[%s1068_s1 + $0x40] sm:$0xff] }
   0xd   :  { %v66_v58 = vmax.f32 %v64_v55, %v65_v56  ;;  %v67_v59 = vsel %vm28_vm0, %v17_v47, -inf  ;;  %v52_v60 = vadd.f32 %v51_v44, %v50_v36  ;;  %v55_v61 = vsel %vm28_vm0, %v27_v35, 0.0  ;;  %v308_v17 = vld [vmem:[%s1068_s1 + $0x38] sm:$0xff]  ;;  %v307_v18 = vld [vmem:[%s1068_s1 + $0x30] sm:$0xff]  ;;  %v306_v19 = vld [vmem:[%s1068_s1 + $0x28] sm:$0xff]  ;;  %s610_s8 = smov 64  }
   0xe   :  { %v84_v62 = vmax.f32 %v82_v54, %v83_v49  ;;  %v69_v63 = vsel %vm28_vm0, %v19_v50, -inf  ;;  %v38_v0 = vadd.f32 %v37_v52, %v36_v51  ;;  %v41_v1 = vsel %vm28_vm0, %v19_v50, 0.0  ;;  %v305_v20 = vld [vmem:[%s1068_s1 + $0x20] sm:$0xff]  ;;  %v304_v21 = vld [vmem:[%s1068_s1 + $0x18] sm:$0xff]  ;;  %v303_v22 = vld [vmem:[%s1068_s1 + $0x10] sm:$0xff] }
   0xf   :  { %v68_v2 = vmax.f32 %v66_v58, %v67_v59  ;;  %v54_v3 = vadd.f32 %v53_v53, %v52_v60  ;;  %v607_v9 = vmov 0.0   ;;  %v302_v23 = vld [vmem:[%s1068_s1 + $0x8] sm:$0xff]  ;;  %v301_v24 = vld [vmem:[%s1068_s1] sm:$0xff]  ;;  %v328_v25 = vld [vmem:[%s1068_s1 + $0xd8] sm:$0xff]  ;;  %v105_v28 = vlaneseq }
  0x10   :  { %95 = vrot.lane.b32.xlu1 %v84_v62, %s606_s5  ;;  %v40_v4 = vadd.f32 %v39_v57, %v38_v0  ;;  %341 = vmatprep.subr.mxu0 %v607_v9  ;;  %v327_v26 = vld [vmem:[%s1068_s1 + $0xd0] sm:$0xff]  ;;  %v326_v27 = vld [vmem:[%s1068_s1 + $0xc8] sm:$0xff]  ;;  %v325_v32 = vld [vmem:[%s1068_s1 + $0xc0] sm:$0xff]  ;;  %vm278_vm13 = vcmask 261120   ;;  %vm283_vm14 = vcmask 523264   ;;  %vm288_vm15 = vcmask 785408  }
  0x11   :  { %v70_v5 = vmax.f32 %v68_v2, %v69_v63  ;;  %v716_v6 = vadd.f32 %v55_v61, %v54_v3  ;;  %474 = vmatprep.subr.mxu1 %v607_v9  ;;  %342 = vmatpush1.msra.mxu0 %v316_v8  ;;  %v818_v30 = vshrl.u32 %v105_v28, 7  ;;  %v324_v33 = vld [vmem:[%s1068_s1 + $0xb8] sm:$0xff]  ;;  %v322_v45 = vld [vmem:[%s1068_s1 + $0xa8] sm:$0xff]  ;;  %v321_v58 = vld [vmem:[%s1068_s1 + $0xa0] sm:$0xff] }
  0x12   :  { %v718_v7 = vadd.f32 %v41_v1, %v40_v4  ;;  %502 = vmatpush1.msra.mxu1 %v316_v8  ;;  %343 = vmatprep.subr.mxu0 %v607_v9  ;;  %v320_v8 = vld [vmem:[%s1068_s1 + $0x98] sm:$0xff] }
  0x13   :  { %91 = vrot.lane.b32.xlu0 %v70_v5, %s606_s5  ;;  %475 = vmatprep.subr.mxu1 %v607_v9  ;;  %vm172_vm1 = vcmp.lt.s32.totalorder %v818_v30, 6  ;;  %vm187_vm2 = vcmp.lt.s32.totalorder %v818_v30, 5  ;;  %vm142_vm3 = vcmp.lt.s32.totalorder %v818_v30, 1  ;;  %vm127_vm4 = vcmp.lt.s32.totalorder %v818_v30, 2  ;;  %s609_s5 = smov 32  }
  0x14   :  { %344 = vmatpush1.msra.mxu0 %v315_v10  ;;  %503 = vmatpush1.msra.mxu1 %v315_v10  ;;  %vm132_vm5 = vcmp.ge.s32.totalorder %v818_v30, 2  ;;  %vm147_vm6 = vcmp.ge.s32.totalorder %v818_v30, 1  ;;  %v849_v39 = vadd.s32 8, %v818_v30  ;;  %vm157_vm7 = vcmp.lt.s32.totalorder %v818_v30, 7 }
  0x15   :  { %345 = vmatprep.subr.mxu0 %v607_v9  ;;  %476 = vmatprep.subr.mxu1 %v607_v9  ;;  %vm112_vm8 = vcmp.lt.s32.totalorder %v818_v30, 3  ;;  %vm117_vm10 = vcmp.ge.s32.totalorder %v818_v30, 3 }
  0x16   :  { %346 = vmatpush1.msra.mxu0 %v314_v11  ;;  %504 = vmatpush1.msra.mxu1 %v314_v11  ;;  %vm163_vm9 = vcmp.lt.s32.totalorder %v849_v39, 15  ;;  %vm178_vm11 = vcmp.lt.s32.totalorder %v849_v39, 14  ;;  %vm193_vm12 = vcmp.lt.s32.totalorder %v849_v39, 13 }
  0x17   :  { %347 = vmatprep.subr.mxu0 %v607_v9  ;;  %477 = vmatprep.subr.mxu1 %v607_v9 }
  0x18   :  { %348 = vmatpush1.msra.mxu0 %v313_v12  ;;  %505 = vmatpush1.msra.mxu1 %v313_v12 }
  0x19   :  { %349 = vmatprep.subr.mxu0 %v607_v9  ;;  %478 = vmatprep.subr.mxu1 %v607_v9 }
  0x1a   :  { %350 = vmatpush1.msra.mxu0 %v312_v13  ;;  %506 = vmatpush1.msra.mxu1 %v312_v13 }
  0x1b   :  { %351 = vmatprep.subr.mxu0 %v607_v9  ;;  %479 = vmatprep.subr.mxu1 %v607_v9 }
  0x1c   :  { %352 = vmatpush1.msra.mxu0 %v311_v14  ;;  %507 = vmatpush1.msra.mxu1 %v311_v14 }
  0x1d   :  { %353 = vmatprep.subr.mxu0 %v607_v9  ;;  %480 = vmatprep.subr.mxu1 %v607_v9 }
  0x1e   :  { %354 = vmatpush1.msra.mxu0 %v310_v15  ;;  %508 = vmatpush1.msra.mxu1 %v310_v15 }
  0x1f   :  { %355 = vmatprep.subr.mxu0 %v607_v9  ;;  %481 = vmatprep.subr.mxu1 %v607_v9 }
  0x20   :  { %356 = vmatpush1.msra.mxu0 %v309_v16  ;;  %509 = vmatpush1.msra.mxu1 %v309_v16 }
  0x21   :  { %357 = vmatprep.subr.mxu0 %v607_v9  ;;  %482 = vmatprep.subr.mxu1 %v607_v9 }
  0x22   :  { %358 = vmatpush1.msra.mxu0 %v308_v17  ;;  %510 = vmatpush1.msra.mxu1 %v308_v17 }
  0x23   :  { %359 = vmatprep.subr.mxu0 %v607_v9  ;;  %483 = vmatprep.subr.mxu1 %v607_v9 }
  0x24   :  { %360 = vmatpush1.msra.mxu0 %v307_v18  ;;  %511 = vmatpush1.msra.mxu1 %v307_v18 }
  0x25   :  { %361 = vmatprep.subr.mxu0 %v607_v9  ;;  %484 = vmatprep.subr.mxu1 %v607_v9 }
  0x26   :  { %362 = vmatpush1.msra.mxu0 %v306_v19  ;;  %512 = vmatpush1.msra.mxu1 %v306_v19 }
  0x27   :  { %363 = vmatprep.subr.mxu0 %v607_v9  ;;  %485 = vmatprep.subr.mxu1 %v607_v9 }
  0x28   :  { %364 = vmatpush1.msra.mxu0 %v305_v20  ;;  %513 = vmatpush1.msra.mxu1 %v305_v20 }
  0x29   :  { %365 = vmatprep.subr.mxu0 %v607_v9  ;;  %486 = vmatprep.subr.mxu1 %v607_v9 }
  0x2a   :  { %366 = vmatpush1.msra.mxu0 %v304_v21  ;;  %514 = vmatpush1.msra.mxu1 %v304_v21 }
  0x2b   :  { %367 = vmatprep.subr.mxu0 %v607_v9  ;;  %487 = vmatprep.subr.mxu1 %v607_v9 }
  0x2c   :  { %368 = vmatpush1.msra.mxu0 %v303_v22  ;;  %515 = vmatpush1.msra.mxu1 %v303_v22  ;;  %v319_v22 = vld [vmem:[%s1068_s1 + $0x90] sm:$0xff] }
  0x2d   :  { %369 = vmatprep.subr.mxu0 %v607_v9  ;;  %488 = vmatprep.subr.mxu1 %v607_v9 }
  0x2e   :  { %370 = vmatpush1.msra.mxu0 %v302_v23  ;;  %516 = vmatpush1.msra.mxu1 %v302_v23 }
  0x2f   :  { %371 = vmatprep.subr.mxu0 %v607_v9  ;;  %489 = vmatprep.subr.mxu1 %v607_v9 }
  0x30   :  { %372 = vmatpush1.msra.mxu0 %v301_v24  ;;  %517 = vmatpush1.msra.mxu1 %v301_v24 }
  0x31   :  { %381 = vmatprep.subr.mxu0 %v607_v9  ;;  %490 = vmatprep.subr.mxu1 %v607_v9 }
  0x32   :  { %382 = vmatpush2.msra.mxu0 %v328_v25  ;;  %518 = vmatpush2.msra.mxu1 %v328_v25 }
  0x33   :  { %383 = vmatprep.subr.mxu0 %v607_v9  ;;  %491 = vmatprep.subr.mxu1 %v607_v9 }
  0x34   :  { %384 = vmatpush2.msra.mxu0 %v327_v26  ;;  %519 = vmatpush2.msra.mxu1 %v327_v26 }
  0x35   :  { %385 = vmatprep.subr.mxu0 %v607_v9  ;;  %492 = vmatprep.subr.mxu1 %v607_v9 }
  0x36   :  { %386 = vmatpush2.msra.mxu0 %v326_v27  ;;  %520 = vmatpush2.msra.mxu1 %v326_v27 }
  0x37   :  { %387 = vmatprep.subr.mxu0 %v607_v9  ;;  %493 = vmatprep.subr.mxu1 %v607_v9 }
  0x38   :  { %388 = vmatpush2.msra.mxu0 %v325_v32  ;;  %521 = vmatpush2.msra.mxu1 %v325_v32 }
  0x39   :  { %389 = vmatprep.subr.mxu0 %v607_v9  ;;  %494 = vmatprep.subr.mxu1 %v607_v9 }
  0x3a   :  { %390 = vmatpush2.msra.mxu0 %v324_v33  ;;  %522 = vmatpush2.msra.mxu1 %v324_v33 }
  0x3b   :  { %391 = vmatprep.subr.mxu0 %v607_v9  ;;  %495 = vmatprep.subr.mxu1 %v607_v9 }
  0x7b   :  { %v94_v29 = vpop.permute.xlu1 %93 }
  0x7c   :  { %v822_v31 = vsel %vm28_vm0, %v683_v37, %v94_v29  ;;  %v323_v37 = vld [vmem:[%s1068_s1 + $0xb0] sm:$0xff] }
  0x7d   :  { %v170_v38 = vrot.slane %v822_v31, 2  ;;  %v185_v41 = vrot.slane %v822_v31, 3  ;;  %v140_v42 = vrot.slane %v822_v31, 7  ;;  %v125_v43 = vrot.slane %v822_v31, 6  ;;  %392 = vmatpush2.msra.mxu0 %v323_v37  ;;  %523 = vmatpush2.msra.mxu1 %v323_v37 }
  0x7e   :  { %v90_v34 = vpop.permute.xlu0 %89  ;;  %v155_v44 = vrot.slane %v822_v31, 1  ;;  %393 = vmatprep.subr.mxu0 %v607_v9  ;;  %v110_v49 = vrot.slane %v822_v31, 5  ;;  %496 = vmatprep.subr.mxu1 %v607_v9 }
  0x7f   :  { %v832_v35 = vsel %vm28_vm0, %v698_v48, %v90_v34  ;;  %394 = vmatpush2.msra.mxu0 %v322_v45  ;;  %524 = vmatpush2.msra.mxu1 %v322_v45 }
  0x80   :  { %v538_v36 = vpack.i.bf16 %v822_v31, %v832_v35  ;;  %v168_v47 = vrot.slane %v832_v35, 2  ;;  %v183_v48 = vrot.slane %v832_v35, 3  ;;  %v138_v55 = vrot.slane %v832_v35, 7  ;;  %395 = vmatprep.subr.mxu0 %v607_v9  ;;  %497 = vmatprep.subr.mxu1 %v607_v9 }
  0x81   :  { %v123_v56 = vrot.slane %v832_v35, 6  ;;  %396 = vmatpush2.msra.mxu0 %v321_v58  ;;  %525 = vmatpush2.msra.mxu1 %v321_v58  ;;  %v153_v25 = vrot.slane %v832_v35, 1  ;;  %v108_v26 = vrot.slane %v832_v35, 5  ;;  %v318_v35 = vld [vmem:[%s1068_s1 + $0x88] sm:$0xff] }
  0x82   :  { %v96_v40 = vpop.permute.xlu1 %95  ;;  %539 = vrot.lane.b32.xlu0 %v538_v36, %s608_s28  ;;  %397 = vmatprep.subr.mxu0 %v607_v9 }
  0x83   :  { %v863_v46 = vsel %vm28_vm0, %v716_v6, %v96_v40  ;;  %498 = vmatprep.subr.mxu1 %v607_v9  ;;  %398 = vmatpush2.msra.mxu0 %v320_v8 }
  0x84   :  { %v171_v50 = vrot.slane %v863_v46, 2  ;;  %v186_v51 = vrot.slane %v863_v46, 3  ;;  %v141_v52 = vrot.slane %v863_v46, 7  ;;  %v126_v53 = vrot.slane %v863_v46, 6  ;;  %526 = vmatpush2.msra.mxu1 %v320_v8  ;;  %399 = vmatprep.subr.mxu0 %v607_v9 }
  0x85   :  { %v92_v54 = vpop.permute.xlu0 %91  ;;  %v156_v57 = vrot.slane %v863_v46, 1  ;;  %v111_v59 = vrot.slane %v863_v46, 5  ;;  %499 = vmatprep.subr.mxu1 %v607_v9  ;;  %400 = vmatpush2.msra.mxu0 %v319_v22 }
  0x86   :  { %v888_v60 = vsel %vm28_vm0, %v718_v7, %v92_v54  ;;  %v173_v61 = vsel %vm172_vm1, %v170_v38, %v171_v50  ;;  %v188_v62 = vsel %vm187_vm2, %v185_v41, %v186_v51  ;;  %v143_v63 = vsel %vm142_vm3, %v140_v42, %v141_v52  ;;  %527 = vmatpush2.msra.mxu1 %v319_v22 }
  0x87   :  { %254 = vrot.lane.b32.xlu0 %v173_v61, %s609_s5  ;;  %v169_v0 = vrot.slane %v888_v60, 2  ;;  %v184_v1 = vrot.slane %v888_v60, 3  ;;  %v139_v2 = vrot.slane %v888_v60, 7  ;;  %v124_v3 = vrot.slane %v888_v60, 6  ;;  %401 = vmatprep.subr.mxu0 %v607_v9 }
  0x88   :  { %v128_v4 = vsel %vm127_vm4, %v125_v43, %v126_v53  ;;  %v131_v5 = vsel %vm127_vm4, %v126_v53, %v123_v56  ;;  %v146_v6 = vsel %vm142_vm3, %v141_v52, %v138_v55  ;;  %v914_v7 = vsel %vm172_vm1, %v171_v50, %v168_v47  ;;  %500 = vmatprep.subr.mxu1 %v607_v9 }
  0x89   :  { %v175_v10 = vsel %vm172_vm1, %v168_v47, %v169_v0  ;;  %v190_v11 = vsel %vm187_vm2, %v183_v48, %v184_v1  ;;  %v145_v12 = vsel %vm142_vm3, %v138_v55, %v139_v2  ;;  %v130_v13 = vsel %vm127_vm4, %v123_v56, %v124_v3  ;;  %402 = vmatpush2.msra.mxu0 %v318_v35  ;;  %v317_v47 = vld [vmem:[%s1068_s1 + $0x80] sm:$0xff]  ;;  %s611_s1 = smov [#allocation2]  }
  0x8a   :  { %250 = vrot.lane.b32.xlu1 %v175_v10, %s609_s5  ;;  %v548_v14 = vpack.i.bf16 %v143_v63, %v145_v12  ;;  %v543_v15 = vpack.i.bf16 %v128_v4, %v130_v13  ;;  %v129_v16 = vsel %vm127_vm4, %v124_v3, %v125_v43  ;;  %v134_v17 = vsel %vm132_vm5, %v131_v5, 0.0  ;;  %528 = vmatpush2.msra.mxu1 %v318_v35  ;;  %s459_s14 = sshll.u32 %s611_s1, 4  ;;  %s460_s14 = int_to_ptr.vmem [resolvable:$true] %s459_s14 }
  0x8b   :  { %266 = vrot.lane.b32.xlu0 %v190_v11, %s610_s8  ;;  %v136_v18 = vsel %vm132_vm5, %v129_v16, 0.0  ;;  %v144_v19 = vsel %vm142_vm3, %v139_v2, %v140_v42  ;;  %v149_v20 = vsel %vm147_vm6, %v146_v6, 0.0  ;;  %v174_v21 = vsel %vm172_vm1, %v169_v0, %v170_v38  ;;  %403 = vmatprep.subr.mxu0 %v607_v9  ;;  %s584_s15 = scalar_lea.vmem %s460_s14, 512  ;;  %p589_p1 = scmp.lt.s32.totalorder %s460_s14, %s460_s14 }
  0x8c   :  { %v553_v23 = vpack.i.bf16 %v136_v18, %v134_v17  ;;  %v151_v24 = vsel %vm147_vm6, %v144_v19, 0.0  ;;  %v191_v28 = vsel %vm187_vm2, %v186_v51, %v183_v48  ;;  %v189_v29 = vsel %vm187_vm2, %v184_v1, %v185_v41  ;;  %501 = vmatprep.subr.mxu1 %v607_v9  ;;  %404 = vmatpush2.msra.mxu0 %v317_v47  ;;  %p585_p0 = scmp.ne.s32.totalorder %s460_s14, %s584_s15  ;;  %p590_p2 = scmp.lt.s32.totalorder %s584_s15, %s584_s15 }
  0x8d   :  { %v558_v27 = vpack.i.bf16 %v151_v24, %v149_v20  ;;  %v563_v32 = vpack.i.bf16 %v863_v46, %v888_v60  ;;  %v158_v33 = vsel %vm157_vm7, %v155_v44, %v156_v57  ;;  %v154_v34 = vrot.slane %v888_v60, 1  ;;  %529 = vmatpush2.msra.mxu1 %v317_v47 }
  0x8e   :  { %270 = vrot.lane.b32.xlu1 %v188_v62, %s610_s8  ;;  %v161_v36 = vsel %vm157_vm7, %v156_v57, %v153_v25  ;;  %v116_v37 = vsel %vm112_vm8, %v111_v59, %v108_v26  ;;  %v109_v38 = vrot.slane %v888_v60, 5  ;;  %v989_v40 = vsel %vm112_vm8, %v110_v49, %v111_v59  ;;  %p591_p3 = por %p590_p2, %p589_p1 }
  0x8f   :  { %549 = vrot.lane.b32.xlu0 %v548_v14, %s610_s8  ;;  %v160_v41 = vsel %vm157_vm7, %v153_v25, %v154_v34  ;;  %v159_v42 = vsel %vm157_vm7, %v154_v34, %v155_v44  ;;  %v167_v43 = vsel %vm163_vm9, %v161_v36, 0.0  ;;  %v119_v45 = vsel %vm117_vm10, %v116_v37, 0.0 }
  0x90   :  { %v1005_v46 = vsel %vm163_vm9, %v159_v42, 0.0  ;;  %v114_v44 = vsel %vm112_vm8, %v109_v38, %v110_v49  ;;  %v1016_v48 = vsel %vm112_vm8, %v108_v26, %v109_v38  ;;  %v180_v31 = vsel %vm178_vm11, %v174_v21, 0.0  ;;  %p592_p4 = pnand %p591_p3, %p585_p0 }
  0x91   :  { %v121_v50 = vsel %vm117_vm10, %v114_v44, 0.0  ;;  %v182_v49 = vsel %vm178_vm11, %v914_v7, 0.0  ;;  %v197_v30 = vsel %vm193_vm12, %v191_v28, 0.0  ;;  %v195_v51 = vsel %vm193_vm12, %v189_v29, 0.0 }
  0x92   :  { %544 = vrot.lane.b32.xlu1 %v543_v15, %s609_s5 }
  0x93   :  { %554 = vrot.lane.b32.xlu0 %v553_v23, %s609_s5 }
  0x96   :  { %559 = vrot.lane.b32.xlu1 %v558_v27, %s610_s8 }
  0x97   :  { %252 = vrot.lane.b32.xlu0 %v180_v31, %s609_s5 }
  0x9a   :  { %256 = vrot.lane.b32.xlu1 %v182_v49, %s609_s5 }
  0x9b   :  { %272 = vrot.lane.b32.xlu0 %v197_v30, %s610_s8 }
  0x9e   :  { %268 = vrot.lane.b32.xlu1 %v195_v51, %s610_s8 }
  0xa2   :  { %564 = vrot.lane.b32.xlu1 %v563_v32, %s608_s28 }
  0xf4   :  { %v540_v9 = vpop.permute.xlu0 %539 }
  0xf5   :  { %v542_v6 = vunpack.i.h.bf16 %v540_v9  ;;  %v541_v7 = vunpack.i.l.bf16 %v540_v9 }
  0xf9   :  { %v255_v52 = vpop.permute.xlu0 %254 }
  0xfa   :  { %v295_v56 = vsel %vm278_vm13, %v158_v33, %v255_v52 }
  0xfc   :  { %v251_v53 = vpop.permute.xlu1 %250 }
  0xfd   :  { %v293_v39 = vsel %vm278_vm13, %v160_v41, %v251_v53  ;;  %v267_v54 = vpop.permute.xlu0 %266 }
  0xfe   :  { %v297_v55 = vsel %vm283_vm14, %v293_v39, %v267_v54 }
  0xff   :  { %470 = vmatprep.mubr.msk.f32.mxu0 %vm288_vm15, %v297_v55 }
 0x100   :  { %v271_v57 = vpop.permute.xlu1 %270 }
 0x101   :  { %v299_v58 = vsel %vm283_vm14, %v295_v56, %v271_v57  ;;  %v550_v59 = vpop.permute.xlu0 %549 }
 0x102   :  { %472 = vmatprep.mubr.msk.f32.mxu1 %vm288_vm15, %v299_v58  ;;  %v552_v22 = vunpack.i.h.bf16 %v550_v59  ;;  %v551_v23 = vunpack.i.l.bf16 %v550_v59 }
 0x104   :  { %v545_v60 = vpop.permute.xlu1 %544 }
 0x105   :  { %v555_v61 = vpop.permute.xlu0 %554  ;;  %v547_v17 = vunpack.i.h.bf16 %v545_v60  ;;  %v546_v18 = vunpack.i.l.bf16 %v545_v60 }
 0x106   :  { %v557_v62 = vunpack.i.h.bf16 %v555_v61  ;;  %v556_v63 = vunpack.i.l.bf16 %v555_v61 }
 0x107   :  { %v280_v24 = vsel %vm278_vm13, %v1016_v48, %v546_v18  ;;  %v282_v25 = vsel %vm278_vm13, %v989_v40, %v547_v17 }
 0x108   :  { %v560_v0 = vpop.permute.xlu1 %559  ;;  %v279_v1 = vsel %vm278_vm13, %v119_v45, %v556_v63  ;;  %v281_v2 = vsel %vm278_vm13, %v121_v50, %v557_v62  ;;  %v285_v29 = vsel %vm283_vm14, %v280_v24, %v551_v23  ;;  %v287_v32 = vsel %vm283_vm14, %v282_v25, %v552_v22 }
 0x109   :  { %v562_v3 = vunpack.i.h.bf16 %v560_v0  ;;  %v561_v4 = vunpack.i.l.bf16 %v560_v0  ;;  %v253_v5 = vpop.permute.xlu0 %252 }
 0x10a   :  { %v294_v19 = vsel %vm278_vm13, %v1005_v46, %v253_v5 }
 0x10b   :  { %v284_v8 = vsel %vm283_vm14, %v279_v1, %v561_v4  ;;  %v286_v10 = vsel %vm283_vm14, %v281_v2, %v562_v3 }
 0x10c   :  { %v257_v11 = vpop.permute.xlu1 %256  ;;  %v289_v12 = vsel %vm288_vm15, %v284_v8, %v541_v7  ;;  %v291_v13 = vsel %vm288_vm15, %v286_v10, %v542_v6 }
 0x10d   :  { %v296_v14 = vsel %vm278_vm13, %v167_v43, %v257_v11  ;;  %406 = vmatmul.mubr.f32.vlgmr.msra.gmra.mxu0 %v289_v12  ;;  %416 = vmatmul.mubr.f32.vlgmr.msra.gmra.mxu1 %v291_v13  ;;  %v273_v15 = vpop.permute.xlu0 %272 }
 0x10e   :  { %v300_v16 = vsel %vm283_vm14, %v296_v14, %v273_v15 }
 0x10f   :  { %473 = vmatprep.mubr.msk.f32.mxu1 %vm288_vm15, %v300_v16 }
 0x110   :  { %v269_v20 = vpop.permute.xlu1 %268 }
 0x111   :  { %v298_v21 = vsel %vm283_vm14, %v294_v19, %v269_v20 }
 0x112   :  { %471 = vmatprep.mubr.msk.f32.mxu0 %vm288_vm15, %v298_v21 }
 0x114   :  { %v565_v26 = vpop.permute.xlu1 %564 }
 0x115   :  { %v567_v27 = vunpack.i.h.bf16 %v565_v26  ;;  %v566_v28 = vunpack.i.l.bf16 %v565_v26 }
 0x117   :  { %v290_v33 = vsel %vm288_vm15, %v285_v29, %v566_v28  ;;  %v292_v34 = vsel %vm288_vm15, %v287_v32, %v567_v27 }
 0x118   :  { %411 = vmatmul.mubr.f32.gmra.mxu0 %v290_v33  ;;  %421 = vmatmul.mubr.f32.gmra.mxu1 %v292_v34 }
 0x1cd   :  { %v407_v35 = vpop.f32.mrf.mxu0  ;;  %v417_v36 = vpop.f32.mrf.mxu1 }
 0x1ce   :  { %v426_v37 = vsub.f32 0.0, %v407_v35  ;;  %v428_v38 = vsub.f32 0.0, %v417_v36 }
 0x1cf   :  { %v409_v41 = vpop.f32.mrf.mxu0  ;;  %v419_v42 = vpop.f32.mrf.mxu1 }
 0x1d0   :  { %v430_v40 = vmul.f32 1.442695, %v426_v37  ;;  %v434_v43 = vmul.f32 1.442695, %v428_v38 }
 0x1d2   :  { %568 = vpow2.f32 %v430_v40 }
 0x1d3   :  { %570 = vpow2.f32 %v434_v43 }
 0x1d8   :  { %v412_v45 = vpop.f32.mrf.mxu0  ;;  %v422_v46 = vpop.f32.mrf.mxu1 }
 0x1d9   :  { %v427_v47 = vsub.f32 0.0, %v412_v45  ;;  %v429_v44 = vsub.f32 0.0, %v422_v46 }
 0x1da   :  { %v414_v48 = vpop.f32.mrf.mxu0  ;;  %v424_v50 = vpop.f32.mrf.mxu1 }
 0x1db   :  { %v432_v31 = vmul.f32 1.442695, %v427_v47  ;;  %v436_v49 = vmul.f32 1.442695, %v429_v44 }
 0x1dd   :  { %572 = vpow2.f32 %v432_v31 }
 0x1de   :  { %574 = vpow2.f32 %v436_v49 }
 0x1df   :  { %v569_v30 = vpop.eup %568 }
 0x1e0   :  { %v571_v51 = vpop.eup %570  ;;  %v438_v9 = vadd.f32 1.0, %v569_v30 }
 0x1e1   :  { %v440_v52 = vadd.f32 1.0, %v571_v51 }
 0x1e2   :  { %576 = vrcp.f32 %v438_v9 }
 0x1e3   :  { %578 = vrcp.f32 %v440_v52 }
 0x1ea   :  { %v573_v53 = vpop.eup %572 }
 0x1eb   :  { %v575_v39 = vpop.eup %574  ;;  %v439_v54 = vadd.f32 1.0, %v573_v53 }
 0x1ec   :  { %v441_v55 = vadd.f32 1.0, %v575_v39 }
 0x1ed   :  { %580 = vrcp.f32 %v439_v54 }
 0x1ee   :  { %582 = vrcp.f32 %v441_v55 }
 0x1ef   :  { %v577_v56 = vpop.eup %576 }
 0x1f0   :  { %v579_v57 = vpop.eup %578  ;;  %450 = vst.msk [vmem:[#allocation2] sm:$0xff] %vm28_vm0, %v577_v56 }
 0x1f1   :  { %452 = vst.msk [vmem:[#allocation2 + $0x10] sm:$0xff] %vm28_vm0, %v579_v57 }
 0x1fa   :  { %v581_v58 = vpop.eup %580 }
 0x1fb   :  { %v583_v59 = vpop.eup %582  ;;  %451 = vst.msk [vmem:[#allocation2 + $0x8] sm:$0xff] %vm28_vm0, %v581_v58 }
 0x1fc   :  { %453 = vst.msk [vmem:[#allocation2 + $0x18] sm:$0xff] %vm28_vm0, %v583_v59 }
 0x1fd   :  { %595 = shalt.err (!%p592_p4)
}
 0x1fe   :  { %s612_s16 = smov 128   ;;  %s613_s17 = smov 8  }
 0x1ff   :  { %465 = dma.vmem_to_hbm [thread:$0]  %s460_s14, 512, %s1069_s2, [#allocation3], %s612_s16, %s612_s16, %s613_s17  }
 0x200   :  { %604 = dma.done.wait [#allocation3], 512  }
 0x201   :  { %605 = vsyncadd [#allocation3], 4294966784 }
 0x202   :  { %469 = vsyncpa [#allocation3], 1 }

</bundles_post_ra>
